<compile_context>
chip_gen: v5e
topology: v5e:2x2
jax: 0.10.0
libtpu: 0.0.40
codegen_flags: <defaults>
</compile_context>

<pallas_src>
import jax
import jax.numpy as jnp
from jax.experimental import pallas as pl
from jax.experimental.pallas import tpu as pltpu


# ---------------------------------------------------------------------------
# In-kernel lane reversal helpers (all inputs are 2-D: (rows, w), lanes last).
# ---------------------------------------------------------------------------
def _reverse_pow2_xlu(x):
    """Reverse the last axis (power-of-two, multiple of 128) with XLU rotates.

    Butterfly over the index bits: stage s selects, per lane i, the element at
    i XOR s from one of two circular rotations.  pltpu.roll issues in the
    vector-extended (XLU) slot, jnp.where in the VALU slot, so the vector
    load/store slots stay free for the DMA pipeline.
    """
    w = x.shape[-1]
    idx = jax.lax.broadcasted_iota(jnp.int32, x.shape, x.ndim - 1)
    s = 1
    while s < w:
        lo = pltpu.roll(x, w - s, axis=x.ndim - 1)  # out[i] = x[(i + s) % w]
        hi = pltpu.roll(x, s, axis=x.ndim - 1)      # out[i] = x[(i - s) % w]
        x = jnp.where((idx & s) == 0, lo, hi)       # wraparound never selected
        s *= 2
    return x


def _reverse_pow2_vector(x):
    """Same butterfly with jnp.roll (static slices + concat): guaranteed Mosaic
    lowering; used only for small / non-128-multiple widths."""
    w = x.shape[-1]
    idx = jax.lax.broadcasted_iota(jnp.int32, x.shape, x.ndim - 1)
    s = 1
    while s < w:
        lo = jnp.roll(x, -s, axis=-1)
        hi = jnp.roll(x, s, axis=-1)
        x = jnp.where((idx & s) == 0, lo, hi)
        s *= 2
    return x


def _reverse_last_axis(x):
    """Exact reverse of the last axis for arbitrary width / any dtype."""
    w = x.shape[-1]
    if w == 1:
        return x
    is_pow2 = (w & (w - 1)) == 0
    if is_pow2:
        return _reverse_pow2_xlu(x) if w % 128 == 0 else _reverse_pow2_vector(x)
    # General width: left-pad to the next power of two; after reversal the
    # reversed payload occupies lanes [0, w), so a single slice finishes the job.
    wp = 1 << (w - 1).bit_length()
    pad = jnp.zeros(x.shape[:-1] + (wp - w,), x.dtype)
    xp = jnp.concatenate([pad, x], axis=-1)
    rev = _reverse_pow2_xlu(xp) if wp % 128 == 0 else _reverse_pow2_vector(xp)
    return jax.lax.slice_in_dim(rev, 0, w, axis=x.ndim - 1)


# ---------------------------------------------------------------------------
# Kernel
# ---------------------------------------------------------------------------
def _hflip_kernel(flag_ref, x_ref, o_ref):
    # flag_ref: (N,) int32 in SMEM (scalar prefetch); x_ref/o_ref: (1, C, TH, TW).
    # The coarse (block-level) mirror already happened in the input index_map;
    # here we only reverse lanes within the TW-wide block when flipping.
    flip = flag_ref[pl.program_id(0)] != 0

    @pl.when(flip)
    def _():
        blk = x_ref[...]
        tw = blk.shape[-1]
        flat = blk.reshape(-1, tw)  # (C*TH, TW): lane-dense, rank-2 for XLU roll
        o_ref[...] = _reverse_last_axis(flat).reshape(blk.shape)

    @pl.when(jnp.logical_not(flip))
    def _():
        o_ref[...] = x_ref[...]


# ---------------------------------------------------------------------------
# Tiling heuristics
# ---------------------------------------------------------------------------
def _pick_tiles(n, c, h, w, itemsize, *, budget_bytes=2 << 20, min_steps=8):
    # W tiling: 128-lane blocks when possible -> only a within-128 lane reversal
    # remains in-kernel; otherwise keep the whole width in one block.
    tw = 128 if (w % 128 == 0) else w
    n_wb = w // tw
    # Dtype-aware sublane packing: 8 rows (4B), 16 (2B), 32 (1B).
    sub = max(8, 32 // max(1, itemsize))
    # Largest H tile (full H, or a multiple of `sub`) whose block fits the budget.
    if c * h * tw * itemsize <= budget_bytes:
        th = h
    else:
        th = budget_bytes // (c * tw * itemsize)
        th = max(sub, (th // sub) * sub)
        th = min(th, h)
    # Make sure the software pipeline has a few steps to overlap (and that v7x's
    # two TensorCores both get work) even when a whole image fits one block.
    while n * pl.cdiv(h, th) * n_wb < min_steps and th >= 2 * sub:
        th = max(sub, ((th // 2) // sub) * sub)
    return th, tw, n_wb


# ---------------------------------------------------------------------------
# Wrapper
# ---------------------------------------------------------------------------
@jax.jit
def random_hflip_with_pose(image, flip_flag):
    """image: (N, C, H, W).  flip_flag: (N,) bool/int.  Returns same shape/dtype."""
    n, c, h, w = image.shape
    assert flip_flag.shape == (n,)
    flag = flip_flag.astype(jnp.int32)

    th, tw, n_wb = _pick_tiles(n, c, h, w, image.dtype.itemsize)
    grid = (n, pl.cdiv(h, th), n_wb)
    block = (1, c, th, tw)

    def in_index_map(b, hb, wb, flag_ref):
        # Mirror the W-block index for flipped images (scalar-prefetched flag is
        # 0/1, so plain integer arithmetic is enough): wb -> n_wb - 1 - wb.
        f = flag_ref[b]
        return (b, 0, hb, wb + f * (n_wb - 1 - 2 * wb))

    def out_index_map(b, hb, wb, flag_ref):
        return (b, 0, hb, wb)

    nbytes = image.size * image.dtype.itemsize

    return pl.pallas_call(
        _hflip_kernel,
        out_shape=jax.ShapeDtypeStruct(image.shape, image.dtype),
        grid_spec=pltpu.PrefetchScalarGridSpec(
            num_scalar_prefetch=1,
            grid=grid,
            in_specs=[pl.BlockSpec(block, in_index_map)],
            out_specs=pl.BlockSpec(block, out_index_map),
        ),
        compiler_params=pltpu.CompilerParams(
            dimension_semantics=("parallel", "parallel", "parallel"),
            vmem_limit_bytes=32 << 20,
        ),
        cost_estimate=pl.CostEstimate(
            flops=0, transcendentals=0, bytes_accessed=2 * nbytes),
    )(flag, image)


class RandomHorizontalFlipWithPose:
    """JAX/Pallas port of the PyTorch module (no learnable parameters)."""

    def __init__(self, p=0.5):
        self.p = p

    def get_flip_flag(self, key, n_image):
        # torch.rand(n_image) < p  ->  jax.random.uniform(key, (n,)) < p
        return jax.random.uniform(key, (n_image,)) < self.p

    def __call__(self, image, flip_flag=None, key=None):
        n_image = image.shape[0]
        if flip_flag is not None:
            assert n_image == flip_flag.shape[0]
        else:
            assert key is not None, "provide a PRNG key when flip_flag is None"
            flip_flag = self.get_flip_flag(key, n_image)
        return random_hflip_with_pose(image, flip_flag)


if __name__ == "__main__":
    key = jax.random.PRNGKey(0)
    k1, k2, k3 = jax.random.split(key, 3)

    module = RandomHorizontalFlipWithPose(p=0.5)

    # Case 1: small non-128 width (W=16) -> single W block, vector-fallback reversal.
    img_a = jax.random.normal(k1, (2, 4, 16, 16), dtype=jnp.float32)
    flag_a = jnp.array([True, False])  # exercise both branches
    out_a = jax.block_until_ready(module(img_a, flag_a))
    ref_a = jnp.where(flag_a[:, None, None, None], img_a[..., ::-1], img_a)
    assert out_a.shape == img_a.shape and out_a.dtype == img_a.dtype
    assert jnp.array_equal(out_a, ref_a)

    # Case 2: W=256 -> two mirrored 128-lane blocks + XLU (pltpu.roll) butterfly.
    img_b = jax.random.normal(k2, (2, 3, 16, 256), dtype=jnp.float32)
    flag_b = module.get_flip_flag(k3, 2)
    flag_b = flag_b.at[0].set(True).at[1].set(False)
    out_b = jax.block_until_ready(module(img_b, flag_b))
    ref_b = jnp.where(flag_b[:, None, None, None], img_b[..., ::-1], img_b)
    assert out_b.shape == img_b.shape and out_b.dtype == img_b.dtype
    assert jnp.array_equal(out_b, ref_b)

    print("KERNEL_OK")
</pallas_src>

<mosaic_0001>
module attributes {stable_mosaic.version = 11 : i64} {
  func.func @_hflip_kernel(%arg0: i32, %arg1: i32, %arg2: i32, %arg3: memref<2xi32, #tpu.memory_space<smem>>, %arg4: memref<1x4x8x16xf32, #tpu.memory_space<vmem>>, %arg5: memref<1x4x8x16xf32, #tpu.memory_space<vmem>>) attributes {dimension_semantics = [#tpu.dimension_semantics<parallel>, #tpu.dimension_semantics<parallel>, #tpu.dimension_semantics<parallel>], iteration_bounds = array<i64: 2, 2, 1>, scalar_prefetch = 1 : i64, scratch_operands = 0 : i64, tpu.core_type = #tpu.core_type<tc>, window_params = [{transform_indices = @transform_0, window_bounds = array<i64: 1, 4, 8, 16>}, {transform_indices = @transform_1, window_bounds = array<i64: 1, 4, 8, 16>}]} {
    %0 = arith.index_cast %arg0 : i32 to index
    %1 = memref.load %arg3[%0] : memref<2xi32, #tpu.memory_space<smem>>
    %c0_i32 = arith.constant 0 : i32
    %2 = arith.cmpi ne, %1, %c0_i32 : i32
    %3 = arith.extui %2 : i1 to i32
    %c0_i32_0 = arith.constant 0 : i32
    %4 = arith.cmpi ne, %3, %c0_i32_0 : i32
    scf.if %4 {
      %c0 = arith.constant 0 : index
      %c0_2 = arith.constant 0 : index
      %c0_3 = arith.constant 0 : index
      %c0_4 = arith.constant 0 : index
      %8 = vector.load %arg4[%c0, %c0_2, %c0_3, %c0_4] : memref<1x4x8x16xf32, #tpu.memory_space<vmem>>, vector<1x4x8x16xf32>
      %9 = vector.shape_cast %8 : vector<1x4x8x16xf32> to vector<32x16xf32>
      %10 = tpu.iota {dimensions = array<i32: 1>} : vector<32x16xi32>
      %11 = vector.extract_strided_slice %9 {offsets = [0, 1], sizes = [32, 15], strides = [1, 1]} : vector<32x16xf32> to vector<32x15xf32>
      %12 = vector.extract_strided_slice %9 {offsets = [0, 0], sizes = [32, 1], strides = [1, 1]} : vector<32x16xf32> to vector<32x1xf32>
      %13 = tpu.concatenate %11, %12 in 1 : vector<32x15xf32>, vector<32x1xf32> -> vector<32x16xf32>
      %14 = vector.extract_strided_slice %9 {offsets = [0, 15], sizes = [32, 1], strides = [1, 1]} : vector<32x16xf32> to vector<32x1xf32>
      %15 = vector.extract_strided_slice %9 {offsets = [0, 0], sizes = [32, 15], strides = [1, 1]} : vector<32x16xf32> to vector<32x15xf32>
      %16 = tpu.concatenate %14, %15 in 1 : vector<32x1xf32>, vector<32x15xf32> -> vector<32x16xf32>
      %c1_i32 = arith.constant 1 : i32
      %17 = vector.broadcast %c1_i32 : i32 to vector<32x16xi32>
      %18 = arith.andi %10, %17 : vector<32x16xi32>
      %c0_i32_5 = arith.constant 0 : i32
      %19 = vector.broadcast %c0_i32_5 : i32 to vector<32x16xi32>
      %20 = arith.cmpi eq, %18, %19 : vector<32x16xi32>
      %21 = arith.select %20, %13, %16 : vector<32x16xi1>, vector<32x16xf32>
      %22 = vector.extract_strided_slice %21 {offsets = [0, 2], sizes = [32, 14], strides = [1, 1]} : vector<32x16xf32> to vector<32x14xf32>
      %23 = vector.extract_strided_slice %21 {offsets = [0, 0], sizes = [32, 2], strides = [1, 1]} : vector<32x16xf32> to vector<32x2xf32>
      %24 = tpu.concatenate %22, %23 in 1 : vector<32x14xf32>, vector<32x2xf32> -> vector<32x16xf32>
      %25 = vector.extract_strided_slice %21 {offsets = [0, 14], sizes = [32, 2], strides = [1, 1]} : vector<32x16xf32> to vector<32x2xf32>
      %26 = vector.extract_strided_slice %21 {offsets = [0, 0], sizes = [32, 14], strides = [1, 1]} : vector<32x16xf32> to vector<32x14xf32>
      %27 = tpu.concatenate %25, %26 in 1 : vector<32x2xf32>, vector<32x14xf32> -> vector<32x16xf32>
      %c2_i32 = arith.constant 2 : i32
      %28 = vector.broadcast %c2_i32 : i32 to vector<32x16xi32>
      %29 = arith.andi %10, %28 : vector<32x16xi32>
      %c0_i32_6 = arith.constant 0 : i32
      %30 = vector.broadcast %c0_i32_6 : i32 to vector<32x16xi32>
      %31 = arith.cmpi eq, %29, %30 : vector<32x16xi32>
      %32 = arith.select %31, %24, %27 : vector<32x16xi1>, vector<32x16xf32>
      %33 = vector.extract_strided_slice %32 {offsets = [0, 4], sizes = [32, 12], strides = [1, 1]} : vector<32x16xf32> to vector<32x12xf32>
      %34 = vector.extract_strided_slice %32 {offsets = [0, 0], sizes = [32, 4], strides = [1, 1]} : vector<32x16xf32> to vector<32x4xf32>
      %35 = tpu.concatenate %33, %34 in 1 : vector<32x12xf32>, vector<32x4xf32> -> vector<32x16xf32>
      %36 = vector.extract_strided_slice %32 {offsets = [0, 12], sizes = [32, 4], strides = [1, 1]} : vector<32x16xf32> to vector<32x4xf32>
      %37 = vector.extract_strided_slice %32 {offsets = [0, 0], sizes = [32, 12], strides = [1, 1]} : vector<32x16xf32> to vector<32x12xf32>
      %38 = tpu.concatenate %36, %37 in 1 : vector<32x4xf32>, vector<32x12xf32> -> vector<32x16xf32>
      %c4_i32 = arith.constant 4 : i32
      %39 = vector.broadcast %c4_i32 : i32 to vector<32x16xi32>
      %40 = arith.andi %10, %39 : vector<32x16xi32>
      %c0_i32_7 = arith.constant 0 : i32
      %41 = vector.broadcast %c0_i32_7 : i32 to vector<32x16xi32>
      %42 = arith.cmpi eq, %40, %41 : vector<32x16xi32>
      %43 = arith.select %42, %35, %38 : vector<32x16xi1>, vector<32x16xf32>
      %44 = vector.extract_strided_slice %43 {offsets = [0, 8], sizes = [32, 8], strides = [1, 1]} : vector<32x16xf32> to vector<32x8xf32>
      %45 = vector.extract_strided_slice %43 {offsets = [0, 0], sizes = [32, 8], strides = [1, 1]} : vector<32x16xf32> to vector<32x8xf32>
      %46 = tpu.concatenate %44, %45 in 1 : vector<32x8xf32>, vector<32x8xf32> -> vector<32x16xf32>
      %47 = vector.extract_strided_slice %43 {offsets = [0, 8], sizes = [32, 8], strides = [1, 1]} : vector<32x16xf32> to vector<32x8xf32>
      %48 = vector.extract_strided_slice %43 {offsets = [0, 0], sizes = [32, 8], strides = [1, 1]} : vector<32x16xf32> to vector<32x8xf32>
      %49 = tpu.concatenate %47, %48 in 1 : vector<32x8xf32>, vector<32x8xf32> -> vector<32x16xf32>
      %c8_i32 = arith.constant 8 : i32
      %50 = vector.broadcast %c8_i32 : i32 to vector<32x16xi32>
      %51 = arith.andi %10, %50 : vector<32x16xi32>
      %c0_i32_8 = arith.constant 0 : i32
      %52 = vector.broadcast %c0_i32_8 : i32 to vector<32x16xi32>
      %53 = arith.cmpi eq, %51, %52 : vector<32x16xi32>
      %54 = arith.select %53, %46, %49 : vector<32x16xi1>, vector<32x16xf32>
      %55 = vector.shape_cast %54 : vector<32x16xf32> to vector<1x4x8x16xf32>
      %c0_9 = arith.constant 0 : index
      %c0_10 = arith.constant 0 : index
      %c0_11 = arith.constant 0 : index
      %c0_12 = arith.constant 0 : index
      %56 = vector.load %arg5[%c0_9, %c0_10, %c0_11, %c0_12] : memref<1x4x8x16xf32, #tpu.memory_space<vmem>>, vector<1x4x8x16xf32>
      tpu.vector_store %arg5[%c0_9, %c0_10, %c0_11, %c0_12], %55 {strides = array<i32>} : memref<1x4x8x16xf32, #tpu.memory_space<vmem>>, vector<1x4x8x16xf32>,
    } else {
    }
    %true = arith.constant true
    %5 = arith.xori %2, %true : i1
    %6 = arith.extui %5 : i1 to i32
    %c0_i32_1 = arith.constant 0 : i32
    %7 = arith.cmpi ne, %6, %c0_i32_1 : i32
    scf.if %7 {
      %c0 = arith.constant 0 : index
      %c0_2 = arith.constant 0 : index
      %c0_3 = arith.constant 0 : index
      %c0_4 = arith.constant 0 : index
      %8 = vector.load %arg4[%c0, %c0_2, %c0_3, %c0_4] : memref<1x4x8x16xf32, #tpu.memory_space<vmem>>, vector<1x4x8x16xf32>
      %c0_5 = arith.constant 0 : index
      %c0_6 = arith.constant 0 : index
      %c0_7 = arith.constant 0 : index
      %c0_8 = arith.constant 0 : index
      %9 = vector.load %arg5[%c0_5, %c0_6, %c0_7, %c0_8] : memref<1x4x8x16xf32, #tpu.memory_space<vmem>>, vector<1x4x8x16xf32>
      tpu.vector_store %arg5[%c0_5, %c0_6, %c0_7, %c0_8], %8 {strides = array<i32>} : memref<1x4x8x16xf32, #tpu.memory_space<vmem>>, vector<1x4x8x16xf32>,
    } else {
    }
    return
  }
  func.func @transform_0(%arg0: i32, %arg1: i32, %arg2: i32, %arg3: memref<2xi32, #tpu.memory_space<smem>>) -> (i32, i32, i32, i32) {
    %0 = arith.index_cast %arg0 : i32 to index
    %1 = memref.load %arg3[%0] : memref<2xi32, #tpu.memory_space<smem>>
    %c2_i32 = arith.constant 2 : i32
    %2 = arith.muli %c2_i32, %arg2 : i32
    %c0_i32 = arith.constant 0 : i32
    %3 = arith.subi %c0_i32, %2 : i32
    %4 = arith.muli %1, %3 : i32
    %5 = arith.addi %arg2, %4 : i32
    %c0_i32_0 = arith.constant 0 : i32
    %c0_i32_1 = arith.constant 0 : i32
    return %arg0, %c0_i32_0, %arg1, %5 : i32, i32, i32, i32
  }
  func.func @transform_1(%arg0: i32, %arg1: i32, %arg2: i32, %arg3: memref<2xi32, #tpu.memory_space<smem>>) -> (i32, i32, i32, i32) {
    %c0_i32 = arith.constant 0 : i32
    %c0_i32_0 = arith.constant 0 : i32
    return %arg0, %c0_i32, %arg1, %arg2 : i32, i32, i32, i32
  }
}

</mosaic_0001>

<bundles_post_ra>
// kernel: random_hflip_with_pose.1
= control target key start
LH: loop header
LB: loop body
LE: loop exit
PB: predicated region body
PF: predicated region fallthrough
CT: control target
= control target key end

     0   :  { %s833_s12 = smov [#allocation3]   ;;  %s1105_s0 = inlined_call_operand.vmem [shape: s32[2], index: 0, kind: input, shape index: {}]   ;;  %s1106_s1 = inlined_call_operand.hbm [shape: f32[2,4,16,16], index: 1, kind: input, shape index: {}]   ;;  %s1107_s2 = inlined_call_operand.hbm [shape: f32[2,4,16,16], index: 2, kind: output, shape index: {}]  }
   0x1   :  { %s8_s11 = sshll.u32 %s1105_s0, 4  ;;  %s9_s11 = int_to_ptr.vmem [resolvable:$true] %s8_s11 }
   0x2   :  { %11 = dma.vmem_to_smem %s9_s11, 16, %s833_s12, [#allocation2] }
   0x3   :  { %791 = dma.done.wait [#allocation2], 16 }
   0x4   :  { %792 = vsyncadd [#allocation2], 4294967280 }
   0x5   :  { %14 = sfence }
   0x6   :  { %15 = vsyncpa [#allocation5], 0 }
   0x7   :  { %17 = vsyncpa [#allocation5 + $0x1], 0 }
   0x8   :  { %18 = vsyncpa [#allocation6], 0 }
   0x9   :  { %20 = vsyncpa [#allocation6 + $0x1], 0  ;;  %s872_s13 = smov 0   ;;  %s874_s14 = smov 0  }
   0xa   :  { %s876_s15 = smov 0   ;;  %s878_s16 = smov 0  }
   0xb   :  { %s880_s17 = smov 0   ;;  %s882_s0 = smov 0  }
   0xc   :  { %s884_s18 = smov 0   ;;  %s886_s19 = smov 0  }
   0xd LB: > { %s573_s20 = sadd.s32 4294967295, %s831_s19   ;;  %s574_s21 = sadd.s32 4294967294, %s831_s19   ;;  %s831_s19 = sphi %s886_s19, %s26_s19   ;;  %s827_s18 = sphi %s884_s18, %s1127_s18   ;;  %s823_s0 = sphi %s882_s0, %s1126_s0   ;;  %s819_s17 = sphi %s880_s17, %s1125_s17   ;;  %s815_s16 = sphi %s878_s16, %s1124_s16   ;;  %s811_s15 = sphi %s876_s15, %s1123_s15   ;;  %s807_s14 = sphi %s874_s14, %s1122_s14   ;;  %s803_s13 = sphi %s872_s13, %s1121_s13  }
   0xe   : > { %s41_s22 = sadd.s32 1, %s823_s0  ;;  %s45_s23 = sadd.s32 1, %s827_s18 }
   0xf   : > { %p43_p0 = scmp.ge.s32.totalorder %s41_s22, 2  ;;  %s66_s24 = sadd.s32 1, %s811_s15 }
  0x10   : > { %p73_p1 = scmp.ne.s32.totalorder %s811_s15, %s807_s14  ;;  %p74_p2 = scmp.eq.s32.totalorder %s831_s19, 0 }
  0x11   : > { %s1129_s22 = smov (%p43_p0, %s41_s22), 0  ;;  %s1131_s23 = smov (!%p43_p0, %s45_s23), %s827_s18 }
  0x12   : > { %s60_s25 = ssub.s32 %s823_s0, %s1129_s22  ;;  %p925_p3 = por %p74_p2, %p73_p1 }
  0x13   : > { %p47_p4 = scmp.ge.s32.totalorder %s1131_s23, 2  ;;  %p79_p5 = scmp.ne.s32.totalorder %s807_s14, %s803_s13 }
  0x14   : > { %p80_p6 = scmp.eq.s32.totalorder %s573_s20, 0  ;;  %p107_p7 = scmp.eq.s32.totalorder %s573_s20, 3 }
  0x15   : > { %s1133_s23 = smov (%p47_p4, %s1131_s23), 0  ;;  %p113_p10 = scmp.eq.s32.totalorder %s574_s21, 3 }
  0x16   : > { %1110 = sst [smem:[#allocation11_spill]] %s1133_s23  ;;  %p933_p8 = por %p80_p6, %p79_p5 }
  0x17   : > { %p937_p9 = por %p107_p7, %p73_p1  ;;  %s59_s29 = ssub.s32 %s827_s18, %s1133_s23 }
  0x18   : > { %s61_s30 = sor.u32 %s60_s25, %s59_s29  ;;  %p943_p12 = por %p113_p10, %p79_p5 }
  0x19   : > { %p64_p11 = scmp.eq.s32.totalorder %s61_s30, 0  ;;  %p602_p13 = scmp.lt.s32.totalorder %s831_s19, 4 }
  0x1a   : > { %s133_s4 = sand.u32 1, %s811_s15   ;;  %s578_s7 = sshll.u32 %s827_s18, 3 }
  0x1b   : > { %s950_s5 = scalar_select %p64_p11, %s811_s15, %s66_s24  }
  0x1c   : > { %s577_s6 = sshll.u32 %s133_s4, 5  ;;  %s147_s8 = sadd.s32 %s823_s0, %s578_s7 }
  0x1d   : > { %s137_s9 = scalar_lea.vmem [#allocation4], %s577_s6  ;;  %s579_s11 = sshll.u32 %s147_s8, 3 }
  0x1e   : > { %s152_s10 = sshll.u32 %s137_s9, 4  ;;  %s149_s21 = scalar_lea.hbm %s1106_s1, %s579_s11  ;;  %s153_s10 = int_to_ptr.vmem [resolvable:$true] %s152_s10 }
  0x1f   : > { %p595_p0 = pnand %p602_p13, %p925_p3  ;;  %s150_s25 = sshll.u32 %s149_s21, 4  ;;  %s151_s25 = int_to_ptr.hbm [resolvable:$true] %s150_s25 }
  0x20   : > { %s134_s29 = scalar_lea.sflag [#allocation5], %s133_s4  ;;  %s834_s24 = smov 256  }
  0x21   : > { %s835_s30 = smov 128   ;;  %s836_s23 = smov 8  }
  0x22   : > { %597 = dma.hbm_to_vmem [thread:$0]  (!%p595_p0), %s151_s25, 512, %s153_s10, %s134_s29, %s834_s24, %s835_s30, %s836_s23  }
  0x23   : > { %p580_p1 = scmp.ge.s32.totalorder %s831_s19, 1  ;;  %p160_p2 = scmp.lt.s32.totalorder %s831_s19, 5 }
  0x25   : > { %p161_p4 = pnand %p580_p1, %p160_p2 }
  0x26   : > { %s962_s6 = sand.u32 (!%p161_p4), 1, %s807_s14  }
  0x27   : > { %164 = sbr.rel (%p161_p4) target bundleno = 663 (0x297), region = 24  ;;  %s581_s7 = sshll.u32 (!%p161_p4), %s962_s6, 5 }
  0x28   : > { %s167_s26 = scalar_lea.sflag (!%p161_p4), [#allocation5], %s962_s6  ;;  %s966_s8 = scalar_lea.vmem (!%p161_p4), [#allocation4], %s581_s7 }
  0x2c   : > { %794 = dma.done.wait (%p933_p8), %s167_s26, 512  }
  0x2d   : > { %796 = vsyncadd (%p933_p8), %s167_s26, 4294966784  ;;  %s973_s23 = sld [smem:[#allocation3 + %s819_s17]]  ;;  %s975_s4 = scalar_lea.vmem [#allocation7], %s581_s7 }
  0x33   : > { %p583_p3 = scmp.eq.s32.totalorder %s973_s23, 0 }
  0x34   : > { %s837_s9 = smov (!%p583_p3), 127   ;;  %s838_s10 = smov (!%p583_p3), 15  }
  0x35   : > { %199 = sbr.rel (%p583_p3) target bundleno = 632 (0x278), region = 32  ;;  %s839_s27 = smov (!%p583_p3), 113  }
  0x36   : > { %s840_s11 = smov (!%p583_p3), 1   ;;  %s841_s12 = smov (!%p583_p3), 126  }
  0x37   : > { %s842_s20 = smov (!%p583_p3), 14   ;;  %s843_s21 = smov (!%p583_p3), 114  }
  0x38   : > { %s844_s25 = smov (!%p583_p3), 2   ;;  %s845_s29 = smov (!%p583_p3), 124  }
  0x39   : > { %s846_s24 = smov (!%p583_p3), 12   ;;  %s847_s30 = smov (!%p583_p3), 116  }
  0x3a   : > { %v202_v0 = vld [vmem:[%s966_s8 + $0x10] sm:$0xff]  ;;  %v200_v1 = vld [vmem:[%s966_s8] sm:$0xff]  ;;  %v203_v2 = vld [vmem:[%s966_s8 + $0x18] sm:$0xff]  ;;  %v204_v11 = vlaneseq  ;;  %vm263_vm0 = vcmask 7168   ;;  %vm234_vm2 = vcmask 121856   ;;  %vm331_vm3 = vcmask 15360  }
  0x3b   : > { %214 = vrot.lane.b32.xlu1 %v202_v0, %s837_s9  ;;  %210 = vrot.lane.b32.xlu0 %v200_v1, %s837_s9  ;;  %v201_v3 = vld [vmem:[%s966_s8 + $0x8] sm:$0xff]  ;;  %vm302_vm4 = vcmask 113664   ;;  %s848_s7 = smov 4   ;;  %vm399_vm6 = vcmask 31744   ;;  %vm370_vm8 = vcmask 97280   ;;  %s849_s26 = smov 120  }
  0x3c   : > { %222 = vrot.lane.b32.xlu2 %v200_v1, %s838_s10  ;;  %v982_v13 = vand.u32 127, %v204_v11  ;;  %vm438_vm9 = vcmask 64512   ;;  %vm443_vm10 = vcmask 130048  }
  0x3e   : > { %v268_v16 = vand.u32 1, %v982_v13  ;;  %v336_v47 = vand.u32 2, %v982_v13 }
  0x40   : > { %vm985_vm1 = vcmp.eq.s32.totalorder %v268_v16, 0  ;;  %vm1006_vm5 = vcmp.eq.s32.totalorder %v336_v47, 0 }
  0x43   : > { %216 = vrot.lane.b32.xlu1 %v203_v2, %s837_s9  ;;  %212 = vrot.lane.b32.xlu0 %v201_v3, %s837_s9  ;;  %s850_s9 = smov 8  }
  0x44   : > { %224 = vrot.lane.b32.xlu2 %v201_v3, %s838_s10 }
  0x4b   : > { %228 = vrot.lane.b32.xlu1 %v203_v2, %s838_s10  ;;  %226 = vrot.lane.b32.xlu0 %v202_v0, %s838_s10 }
  0x4c   : > { %239 = vrot.lane.b32.xlu2 %v200_v1, %s839_s27 }
  0x53   : > { %243 = vrot.lane.b32.xlu1 %v202_v0, %s839_s27  ;;  %241 = vrot.lane.b32.xlu0 %v201_v3, %s839_s27 }
  0x54   : > { %245 = vrot.lane.b32.xlu2 %v203_v2, %s839_s27 }
  0x5b   : > { %253 = vrot.lane.b32.xlu1 %v201_v3, %s840_s11  ;;  %251 = vrot.lane.b32.xlu0 %v200_v1, %s840_s11 }
  0x5c   : > { %255 = vrot.lane.b32.xlu2 %v202_v0, %s840_s11 }
  0x63   : > { %257 = vrot.lane.b32.xlu0 %v203_v2, %s840_s11 }
  0x96   : > { %v223_v4 = vpop.permute.xlu2 %222 }
  0x9e   : > { %v225_v5 = vpop.permute.xlu2 %224 }
  0xa6   : > { %v240_v8 = vpop.permute.xlu2 %239 }
  0xad   : > { %v215_v6 = vpop.permute.xlu1 %214  ;;  %v211_v7 = vpop.permute.xlu0 %210 }
  0xae   : > { %v246_v12 = vpop.permute.xlu2 %245  ;;  %v235_v26 = vsel %vm234_vm2, %v211_v7, %v223_v4 }
  0xb5   : > { %v217_v9 = vpop.permute.xlu1 %216  ;;  %v213_v10 = vpop.permute.xlu0 %212 }
  0xb6   : > { %v256_v17 = vpop.permute.xlu2 %255  ;;  %v236_v27 = vsel %vm234_vm2, %v213_v10, %v225_v5  ;;  %v404_v10 = vand.u32 4, %v982_v13 }
  0xb8   : > { %vm1027_vm7 = vcmp.eq.s32.totalorder %v404_v10, 0 }
  0xbd   : > { %v229_v14 = vpop.permute.xlu1 %228  ;;  %v227_v15 = vpop.permute.xlu0 %226 }
  0xbe   : > { %v237_v21 = vsel %vm234_vm2, %v215_v6, %v227_v15  ;;  %v238_v33 = vsel %vm234_vm2, %v217_v9, %v229_v14 }
  0xc5   : > { %v244_v19 = vpop.permute.xlu1 %243  ;;  %v242_v20 = vpop.permute.xlu0 %241 }
  0xc6   : > { %v266_v22 = vsel %vm263_vm0, %v244_v19, %v256_v17 }
  0xc7   : > { %v272_v23 = vsel %vm985_vm1, %v237_v21, %v266_v22 }
  0xc8   : > { %282 = vrot.lane.b32.xlu0 %v272_v23, %s841_s12 }
  0xcd   : > { %v254_v24 = vpop.permute.xlu1 %253  ;;  %v252_v25 = vpop.permute.xlu0 %251 }
  0xce   : > { %v265_v28 = vsel %vm263_vm0, %v242_v20, %v254_v24  ;;  %v264_v29 = vsel %vm263_vm0, %v240_v8, %v252_v25 }
  0xcf   : > { %v271_v30 = vsel %vm985_vm1, %v236_v27, %v265_v28  ;;  %v270_v31 = vsel %vm985_vm1, %v235_v26, %v264_v29 }
  0xd0   : > { %292 = vrot.lane.b32.xlu0 %v271_v30, %s842_s20  ;;  %280 = vrot.lane.b32.xlu2 %v271_v30, %s841_s12 }
  0xd1   : > { %278 = vrot.lane.b32.xlu1 %v270_v31, %s841_s12 }
  0xd5   : > { %v258_v32 = vpop.permute.xlu0 %257 }
  0xd6   : > { %v267_v34 = vsel %vm263_vm0, %v246_v12, %v258_v32 }
  0xd7   : > { %v273_v35 = vsel %vm985_vm1, %v238_v33, %v267_v34 }
  0xd8   : > { %307 = vrot.lane.b32.xlu0 %v270_v31, %s843_s21  ;;  %290 = vrot.lane.b32.xlu2 %v270_v31, %s842_s20 }
  0xd9   : > { %284 = vrot.lane.b32.xlu1 %v273_v35, %s841_s12 }
  0xe0   : > { %313 = vrot.lane.b32.xlu0 %v273_v35, %s843_s21  ;;  %296 = vrot.lane.b32.xlu2 %v273_v35, %s842_s20 }
  0xe1   : > { %294 = vrot.lane.b32.xlu1 %v272_v23, %s842_s20 }
  0xe8   : > { %323 = vrot.lane.b32.xlu0 %v272_v23, %s844_s25  ;;  %311 = vrot.lane.b32.xlu2 %v272_v23, %s843_s21 }
  0xe9   : > { %309 = vrot.lane.b32.xlu1 %v271_v30, %s843_s21 }
  0xf0   : > { %321 = vrot.lane.b32.xlu2 %v271_v30, %s844_s25 }
  0xf1   : > { %319 = vrot.lane.b32.xlu1 %v270_v31, %s844_s25 }
  0xf9   : > { %325 = vrot.lane.b32.xlu1 %v273_v35, %s844_s25 }
 0x12a   : > { %v281_v36 = vpop.permute.xlu2 %280 }
 0x132   : > { %v291_v38 = vpop.permute.xlu2 %290 }
 0x13a   : > { %v283_v37 = vpop.permute.xlu0 %282  ;;  %v297_v41 = vpop.permute.xlu2 %296 }
 0x142   : > { %v293_v39 = vpop.permute.xlu0 %292  ;;  %v312_v44 = vpop.permute.xlu2 %311 }
 0x143   : > { %v279_v40 = vpop.permute.xlu1 %278  ;;  %v304_v54 = vsel %vm302_vm4, %v281_v36, %v293_v39 }
 0x144   : > { %v303_v59 = vsel %vm302_vm4, %v279_v40, %v291_v38 }
 0x14a   : > { %v308_v42 = vpop.permute.xlu0 %307  ;;  %v322_v50 = vpop.permute.xlu2 %321 }
 0x14b   : > { %v285_v43 = vpop.permute.xlu1 %284 }
 0x14c   : > { %v306_v63 = vsel %vm302_vm4, %v285_v43, %v297_v41 }
 0x152   : > { %v314_v45 = vpop.permute.xlu0 %313 }
 0x153   : > { %v295_v46 = vpop.permute.xlu1 %294 }
 0x154   : > { %v305_v51 = vsel %vm302_vm4, %v283_v37, %v295_v46 }
 0x15a   : > { %v324_v49 = vpop.permute.xlu0 %323 }
 0x15b   : > { %v310_v52 = vpop.permute.xlu1 %309  ;;  %v334_v53 = vsel %vm331_vm3, %v312_v44, %v324_v49 }
 0x15c   : > { %v333_v55 = vsel %vm331_vm3, %v310_v52, %v322_v50  ;;  %v340_v56 = vsel %vm1006_vm5, %v305_v51, %v334_v53 }
 0x15d   : > { %v339_v57 = vsel %vm1006_vm5, %v304_v54, %v333_v55  ;;  %350 = vrot.lane.b32.xlu1 %v340_v56, %s845_s29 }
 0x15e   : > { %348 = vrot.lane.b32.xlu0 %v339_v57, %s845_s29 }
 0x163   : > { %v320_v58 = vpop.permute.xlu1 %319 }
 0x164   : > { %v332_v60 = vsel %vm331_vm3, %v308_v42, %v320_v58 }
 0x165   : > { %v338_v61 = vsel %vm1006_vm5, %v303_v59, %v332_v60  ;;  %360 = vrot.lane.b32.xlu1 %v339_v57, %s846_s24 }
 0x166   : > { %358 = vrot.lane.b32.xlu0 %v338_v61, %s846_s24  ;;  %346 = vrot.lane.b32.xlu2 %v338_v61, %s845_s29 }
 0x16b   : > { %v326_v62 = vpop.permute.xlu1 %325 }
 0x16c   : > { %v335_v0 = vsel %vm331_vm3, %v314_v45, %v326_v62 }
 0x16d   : > { %v341_v1 = vsel %vm1006_vm5, %v306_v63, %v335_v0  ;;  %375 = vrot.lane.b32.xlu1 %v338_v61, %s847_s30 }
 0x16e   : > { %364 = vrot.lane.b32.xlu0 %v341_v1, %s846_s24  ;;  %352 = vrot.lane.b32.xlu2 %v341_v1, %s845_s29 }
 0x175   : > { %381 = vrot.lane.b32.xlu1 %v341_v1, %s847_s30 }
 0x176   : > { %379 = vrot.lane.b32.xlu0 %v340_v56, %s847_s30  ;;  %362 = vrot.lane.b32.xlu2 %v340_v56, %s846_s24 }
 0x17d   : > { %391 = vrot.lane.b32.xlu1 %v340_v56, %s848_s7 }
 0x17e   : > { %389 = vrot.lane.b32.xlu0 %v339_v57, %s848_s7  ;;  %377 = vrot.lane.b32.xlu2 %v339_v57, %s847_s30 }
 0x186   : > { %387 = vrot.lane.b32.xlu2 %v338_v61, %s848_s7 }
 0x18e   : > { %393 = vrot.lane.b32.xlu2 %v341_v1, %s848_s7 }
 0x1c0   : > { %v347_v2 = vpop.permute.xlu2 %346 }
 0x1c8   : > { %v353_v3 = vpop.permute.xlu2 %352 }
 0x1cf   : > { %v351_v4 = vpop.permute.xlu1 %350 }
 0x1d0   : > { %v363_v5 = vpop.permute.xlu2 %362  ;;  %v349_v6 = vpop.permute.xlu0 %348 }
 0x1d1   : > { %v373_v25 = vsel %vm370_vm8, %v351_v4, %v363_v5 }
 0x1d7   : > { %v361_v7 = vpop.permute.xlu1 %360 }
 0x1d8   : > { %v378_v8 = vpop.permute.xlu2 %377  ;;  %v359_v9 = vpop.permute.xlu0 %358  ;;  %v372_v28 = vsel %vm370_vm8, %v349_v6, %v361_v7 }
 0x1d9   : > { %v371_v16 = vsel %vm370_vm8, %v347_v2, %v359_v9 }
 0x1df   : > { %v376_v11 = vpop.permute.xlu1 %375 }
 0x1e0   : > { %v388_v14 = vpop.permute.xlu2 %387  ;;  %v365_v15 = vpop.permute.xlu0 %364 }
 0x1e1   : > { %v400_v17 = vsel %vm399_vm6, %v376_v11, %v388_v14  ;;  %v374_v21 = vsel %vm370_vm8, %v353_v3, %v365_v15 }
 0x1e2   : > { %v406_v18 = vsel %vm1027_vm7, %v371_v16, %v400_v17 }
 0x1e3   : > { %414 = vrot.lane.b32.xlu0 %v406_v18, %s849_s26 }
 0x1e7   : > { %v382_v19 = vpop.permute.xlu1 %381 }
 0x1e8   : > { %v394_v13 = vpop.permute.xlu2 %393  ;;  %v380_v20 = vpop.permute.xlu0 %379 }
 0x1e9   : > { %v403_v22 = vsel %vm399_vm6, %v382_v19, %v394_v13 }
 0x1ea   : > { %v409_v23 = vsel %vm1027_vm7, %v374_v21, %v403_v22 }
 0x1eb   : > { %420 = vrot.lane.b32.xlu0 %v409_v23, %s849_s26 }
 0x1ef   : > { %v392_v24 = vpop.permute.xlu1 %391 }
 0x1f0   : > { %v402_v26 = vsel %vm399_vm6, %v380_v20, %v392_v24  ;;  %v390_v27 = vpop.permute.xlu0 %389 }
 0x1f1   : > { %v401_v29 = vsel %vm399_vm6, %v378_v8, %v390_v27  ;;  %v408_v30 = vsel %vm1027_vm7, %v373_v25, %v402_v26 }
 0x1f2   : > { %418 = vrot.lane.b32.xlu2 %v408_v30, %s849_s26  ;;  %v407_v31 = vsel %vm1027_vm7, %v372_v28, %v401_v29 }
 0x1f3   : > { %430 = vrot.lane.b32.xlu0 %v408_v30, %s850_s9  ;;  %416 = vrot.lane.b32.xlu1 %v407_v31, %s849_s26 }
 0x1fa   : > { %428 = vrot.lane.b32.xlu2 %v407_v31, %s850_s9 }
 0x1fb   : > { %426 = vrot.lane.b32.xlu1 %v406_v18, %s850_s9 }
 0x203   : > { %432 = vrot.lane.b32.xlu1 %v409_v23, %s850_s9 }
 0x24c   : > { %v419_v33 = vpop.permute.xlu2 %418 }
 0x254   : > { %v429_v35 = vpop.permute.xlu2 %428 }
 0x255   : > { %v415_v32 = vpop.permute.xlu0 %414 }
 0x25d   : > { %v421_v34 = vpop.permute.xlu0 %420 }
 0x265   : > { %v417_v36 = vpop.permute.xlu1 %416  ;;  %v431_v37 = vpop.permute.xlu0 %430 }
 0x266   : > { %v440_v38 = vsel %vm438_vm9, %v417_v36, %v429_v35  ;;  %v441_v39 = vsel %vm438_vm9, %v419_v33, %v431_v37 }
 0x267   : > { %445 = vst.msk [vmem:[%s975_s4 + $0x8] sm:$0xff] %vm443_vm10, %v440_v38 }
 0x268   : > { %446 = vst.msk [vmem:[%s975_s4 + $0x10] sm:$0xff] %vm443_vm10, %v441_v39 }
 0x26d   : > { %v427_v40 = vpop.permute.xlu1 %426 }
 0x26e   : > { %v439_v41 = vsel %vm438_vm9, %v415_v32, %v427_v40 }
 0x26f   : > { %444 = vst.msk [vmem:[%s975_s4] sm:$0xff] %vm443_vm10, %v439_v41 }
 0x275   : > { %v433_v42 = vpop.permute.xlu1 %432 }
 0x276   : > { %v442_v43 = vsel %vm438_vm9, %v421_v34, %v433_v42 }
 0x277   : > { %447 = vst.msk [vmem:[%s975_s4 + $0x18] sm:$0xff] %vm443_vm10, %v442_v43 }
 0x278 PF: > { %p584_p5 = scmp.ne.s32.totalorder %s973_s23, 0 }
 0x27a   : > { %451 = sbr.rel (%p584_p5) target bundleno = 644 (0x284), region = 36 }
 0x27f   : > { %v452_v44 = vld [vmem:[%s966_s8] sm:$0xff]  ;;  %vm456_vm11 = vcmask 130048   ;;  %v453_v45 = vld [vmem:[%s966_s8 + $0x8] sm:$0xff]  ;;  %v454_v46 = vld [vmem:[%s966_s8 + $0x10] sm:$0xff] }
 0x280   : > { %457 = vst.msk [vmem:[%s975_s4] sm:$0xff] %vm456_vm11, %v452_v44  ;;  %v455_v47 = vld [vmem:[%s966_s8 + $0x18] sm:$0xff] }
 0x281   : > { %458 = vst.msk [vmem:[%s975_s4 + $0x8] sm:$0xff] %vm456_vm11, %v453_v45 }
 0x282   : > { %459 = vst.msk [vmem:[%s975_s4 + $0x10] sm:$0xff] %vm456_vm11, %v454_v46 }
 0x283   : > { %460 = vst.msk [vmem:[%s975_s4 + $0x18] sm:$0xff] %vm456_vm11, %v455_v47 }
 0x284 PF: > { %s586_s23 = sshll.u32 %s819_s17, 3  ;;  %s476_s27 = sshll.u32 %s975_s4, 4  ;;  %s477_s27 = int_to_ptr.vmem [resolvable:$true] %s476_s27 }
 0x285   : > { %s473_s10 = sadd.s32 %s815_s16, %s586_s23  ;;  %s462_s8 = scalar_lea.sflag [#allocation6], %s962_s6 }
 0x286   : > { %s587_s11 = sshll.u32 %s473_s10, 3  ;;  %s751_s16 = scalar_lea.hbm %s1107_s2, 128 }
 0x287   : > { %s475_s21 = scalar_lea.hbm %s1107_s2, %s587_s11 }
 0x288   : > { %s478_s25 = sshll.u32 %s475_s21, 4  ;;  %s479_s25 = int_to_ptr.hbm [resolvable:$true] %s478_s25 }
 0x289   : > { %s745_s29 = sshra.s32 %s479_s25, 4  ;;  %s746_s29 = int_to_ptr.hbm [resolvable:$true] %s745_s29 }
 0x28a   : > { %s747_s24 = scalar_lea.hbm %s746_s29, 32  ;;  %p752_p10 = scmp.lt.s32.totalorder %s746_s29, %s1107_s2 }
 0x28b   : > { %p748_p6 = scmp.ne.s32.totalorder %s746_s29, %s747_s24  ;;  %p753_p11 = scmp.lt.s32.totalorder %s751_s16, %s747_s24 }
 0x28d   : > { %p749_p7 = pnand %p748_p6, %p937_p9  ;;  %p754_p13 = por %p753_p11, %p752_p10 }
 0x28f   : > { %p750_p8 = pneg %p749_p7 }
 0x291   : > { %p755_p0 = pnand %p754_p13, %p750_p8 }
 0x293   : > { %758 = shalt.err (!%p755_p0)
}
 0x294   : > { %s851_s6 = smov 128   ;;  %s852_s26 = smov 256  }
 0x295   : > { %s853_s9 = smov 8  }
 0x296   : > { %592 = dma.vmem_to_hbm [thread:$0]  (%p937_p9), %s477_s27, 512, %s479_s25, %s462_s8, %s851_s6, %s852_s26, %s853_s9  }
 0x297 PF: > { %p603_p1 = scmp.ge.s32.totalorder %s831_s19, 2  ;;  %s493_s23 = sand.u32 1, %s803_s13  }
 0x298   : > { %s494_s10 = scalar_lea.sflag [#allocation6], %s493_s23 }
 0x299   : > { %p599_p2 = pnand %p603_p1, %p943_p12 }
 0x29b   : > { %p600_p4 = pneg %p599_p2 }
 0x29d   : > { %798 = dma.done.wait (%p600_p4), %s494_s10, 512  }
 0x29e   : > { %800 = vsyncadd (%p600_p4), %s494_s10, 4294966784  ;;  %s26_s19 = sadd.s32 1, %s831_s19   ;;  %s1120_s28 = sld [smem:[#allocation11_spill]] }
 0x29f   : > { %p23_p3 = scmp.ge.s32.totalorder %s26_s19, 6   ;;  %s1121_s13 = smov %s807_s14 }
 0x2a0   : > { %s1122_s14 = smov %s811_s15  ;;  %s1123_s15 = smov %s950_s5 }
 0x2a1   : > { %s1124_s16 = smov %s823_s0  ;;  %s1125_s17 = smov %s827_s18 }
 0x2a2   : > { %s1126_s0 = smov %s1129_s22  ;;  %25 = sbr.rel (!%p23_p3) target bundleno = 13 (0xd), region = 77 }
 0x2a4   : > { %s1127_s18 = smov %s1120_s28 }
 0x2a7   :  { %500 = vsyncpa [#allocation5], 1 }
 0x2a8   :  { %502 = vsyncpa [#allocation5 + $0x1], 1 }
 0x2a9   :  { %503 = vsyncpa [#allocation6], 1 }
 0x2aa   :  { %505 = vsyncpa [#allocation6 + $0x1], 1 }

</bundles_post_ra>
